<compile_context>
chip_gen: v5e
topology: v5e:2x2
jax: 0.10.0
libtpu: 0.0.40
codegen_flags: <defaults>
</compile_context>

<pallas_src>
import functools

import jax
import jax.numpy as jnp
from jax.experimental import pallas as pl
from jax.experimental.pallas import tpu as pltpu


def _round_up(x: int, m: int) -> int:
    return ((x + m - 1) // m) * m


def _tile_caps():
    """Per-generation tile caps derived from per-TensorCore VMEM capacity."""
    try:
        vmem = pltpu.get_tpu_info().vmem_capacity_bytes
    except Exception:
        vmem = 64 * 1024 * 1024                 # conservative (v7x-sized) fallback
    if vmem >= 100 * 1024 * 1024:               # v5e / v6e: 128 MiB per TC
        return dict(tm=512, tk=2048, tn=2048, vmem_limit=96 * 1024 * 1024)
    # v7x: 64 MiB per TC  (~13 MiB live at these caps, f32, double-buffered)
    return dict(tm=256, tk=1024, tn=1024, vmem_limit=48 * 1024 * 1024)


# ----------------------------------------------------------------------------
# Kernels
# ----------------------------------------------------------------------------

def _tiled_kernel(x_ref, w_ref, b_ref, o_ref, acc_ref, *, sa: bool):
    """One (tm, tn) output tile, accumulated over the K grid axis.

    x_ref: [tm, tk]   activations
    w_ref: [tk, tn]   weight, pre-transposed to [in, out] (lane-dense in N)
    b_ref: [1,  tn]   (already SA-corrected) bias, f32
    o_ref: [tm, tn]   output tile
    acc_ref: [tm, tn] f32 accumulator scratch (persists over the K axis)
    """
    k = pl.program_id(2)
    prod = jnp.dot(x_ref[...], w_ref[...], preferred_element_type=jnp.float32)

    @pl.when(k == 0)
    def _():
        acc_ref[...] = prod            # direct write: no zero-init + reload

    @pl.when(k > 0)
    def _():
        acc_ref[...] += prod

    @pl.when(k == pl.num_programs(2) - 1)
    def _():
        acc = acc_ref[...]
        if sa:
            # (2x-1) @ W.T + b == 2*(x @ W.T) + (b - sum_k W): scale once here.
            acc = 2.0 * acc
        o_ref[...] = (acc + b_ref[...]).astype(o_ref.dtype)


def _single_tile_kernel(x_ref, w_ref, b_ref, o_ref, *, sa: bool):
    """Whole problem in one VMEM tile: no grid, no accumulator scratch."""
    acc = jnp.dot(x_ref[...], w_ref[...], preferred_element_type=jnp.float32)
    if sa:
        acc = 2.0 * acc
    o_ref[...] = (acc + b_ref[...]).astype(o_ref.dtype)


# ----------------------------------------------------------------------------
# Wrappers
# ----------------------------------------------------------------------------

def prepare_linked_params(weight, bias, *, method="determ", tile_caps=None):
    """One-time per-layer preparation: transpose/pad W, fold the SA bias.

    weight: PyTorch layout [out_units, in_units] = [N, K].
    Returns a dict consumed by linked_forward_prepared (cache it per layer).
    """
    weight = jnp.asarray(weight)
    bias = jnp.asarray(bias)
    N, K = weight.shape
    sa = "SA" in method

    caps = dict(_tile_caps())
    if tile_caps:
        caps.update(tile_caps)

    tk = min(_round_up(K, 128), caps["tk"])
    lane = 256 if N >= 256 else 128          # 256-wide tiles feed the 2x256 MXU
    tn = min(_round_up(N, lane), caps["tn"])
    # Megacore (2 TCs on v7x): if N is large but would be a single j-block,
    # split it so the 'parallel' grid extent is >= 2.
    if N >= 512 and _round_up(N, tn) // tn < 2:
        tn = _round_up(pl.cdiv(N, 2), lane)
    Kp, Np = _round_up(K, tk), _round_up(N, tn)

    # One-time transpose to [K, N] + pad to the tile grid (native dtype, no upcast).
    wT = weight.T
    if (Kp, Np) != (K, N):
        wT = jnp.pad(wT, ((0, Kp - K), (0, Np - N)))

    # SA fold bias correction, reduced in f32 for precision; kept f32 (tiny).
    if sa:
        b_eff = bias.astype(jnp.float32) - weight.astype(jnp.float32).sum(axis=1)
    else:
        b_eff = bias.astype(jnp.float32)
    bp = (jnp.pad(b_eff, (0, Np - N)) if Np != N else b_eff).reshape(1, Np)

    return dict(wT=wT, b=bp, sa=sa, N=N, K=K, Kp=Kp, Np=Np, tk=tk, tn=tn,
                caps=caps,
                param_dtype=jnp.promote_types(weight.dtype, bias.dtype))


def linked_forward_prepared(x, params, *, sample_batch=None):
    """InputLayer -> linked linear forward, using pre-prepared parameters."""
    x = jnp.asarray(x)
    expand_rows = None
    if x.ndim == 1:
        # All expanded rows are identical: compute ONE row in the kernel and
        # broadcast the small output afterwards (no B-fold HBM traffic).
        expand_rows = sample_batch if sample_batch is not None else 1
        x = x[None, :]

    B, K = x.shape
    assert K == params["K"], (K, params["K"])

    caps = params["caps"]
    Kp, Np, tk, tn = params["Kp"], params["Np"], params["tk"], params["tn"]
    wT, bp, sa = params["wT"], params["b"], params["sa"]

    sub = 256 if B >= 256 else 8
    tm = min(_round_up(B, sub), caps["tm"])
    # Megacore: ensure >= 2 i-blocks for large batches.
    if B >= 512 and _round_up(B, tm) // tm < 2:
        tm = _round_up(pl.cdiv(B, 2), 256)
    Mp = _round_up(B, tm)

    xp = x if (Mp == B and Kp == K) else jnp.pad(x, ((0, Mp - B), (0, Kp - K)))
    out_dtype = jnp.promote_types(x.dtype, params["param_dtype"])

    grid = (Mp // tm, Np // tn, Kp // tk)

    if grid == (1, 1, 1):
        # Small-problem fast path: single VMEM tile, no grid, no scratch.
        out = pl.pallas_call(
            functools.partial(_single_tile_kernel, sa=sa),
            out_shape=jax.ShapeDtypeStruct((Mp, Np), out_dtype),
        )(xp, wT, bp)
    else:
        itemsize = xp.dtype.itemsize
        cost = pl.CostEstimate(
            flops=2 * Mp * Kp * Np,
            transcendentals=0,
            bytes_accessed=(xp.size * itemsize * grid[1]              # x re-read per j
                            + wT.size * wT.dtype.itemsize * grid[0]   # W re-read per i
                            + bp.size * bp.dtype.itemsize
                            + Mp * Np * jnp.dtype(out_dtype).itemsize),
        )
        # TODO(synk): if the W stream shows exposed DMA for large K on v5e,
        # add pipeline_mode=pl.Buffered(3) to the W BlockSpec and sweep.
        out = pl.pallas_call(
            functools.partial(_tiled_kernel, sa=sa),
            out_shape=jax.ShapeDtypeStruct((Mp, Np), out_dtype),
            grid_spec=pltpu.PrefetchScalarGridSpec(
                num_scalar_prefetch=0,
                grid=grid,
                in_specs=[
                    pl.BlockSpec((tm, tk), lambda i, j, k: (i, k)),   # x
                    pl.BlockSpec((tk, tn), lambda i, j, k: (k, j)),   # W^T [K, N]
                    pl.BlockSpec((1, tn), lambda i, j, k: (0, j)),    # bias row
                ],
                out_specs=pl.BlockSpec((tm, tn), lambda i, j, k: (i, j)),
                scratch_shapes=[pltpu.VMEM((tm, tn), jnp.float32)],
            ),
            compiler_params=pltpu.CompilerParams(
                dimension_semantics=("parallel", "parallel", "arbitrary"),
                vmem_limit_bytes=caps["vmem_limit"],
            ),
            cost_estimate=cost,
        )(xp, wT, bp)

    out = out[:B, : params["N"]]
    if expand_rows is not None:
        out = jnp.broadcast_to(out, (expand_rows, params["N"]))
    return out


def linked_forward(x, weight, bias, *, method="determ", sample_batch=None,
                   tile_caps=None):
    """One-shot convenience wrapper (prepares params per call; prefer caching
    prepare_linked_params(...) per layer for repeated forwards)."""
    params = prepare_linked_params(weight, bias, method=method, tile_caps=tile_caps)
    return linked_forward_prepared(x, params, sample_batch=sample_batch)


def reference_forward(x, weight, bias, *, method="determ", sample_batch=None):
    """Pure-JAX reference of the same semantics (for correctness checks)."""
    if sample_batch is None:
        sample_batch = 1
    x = jnp.asarray(x)
    if x.ndim == 1:
        x = jnp.broadcast_to(x[None, :], (sample_batch, x.shape[0]))
    if "SA" in method:
        x = 2.0 * x - 1.0
    return x @ jnp.asarray(weight).T + jnp.asarray(bias)[None, :]


if __name__ == "__main__":
    key = jax.random.PRNGKey(0)
    k_x, k_xb, k_w, k_b, k_x2, k_w2, k_b2 = jax.random.split(key, 7)

    # ---- Small shapes consistent with the module (fast single-tile path) ----
    in_units = 32      # prev.out_units
    out_units = 8      # this LinkedLayer's out_units
    sample_batch = 8

    bound = 1.0 / (in_units ** 0.5)
    weight = jax.random.uniform(k_w, (out_units, in_units),
                                minval=-bound, maxval=bound, dtype=jnp.float32)
    bias = jax.random.uniform(k_b, (out_units,),
                              minval=-bound, maxval=bound, dtype=jnp.float32)

    x_1d = jax.random.uniform(k_x, (in_units,), dtype=jnp.float32)
    x_2d = jax.random.uniform(k_xb, (sample_batch, in_units), dtype=jnp.float32)

    for method in ("determ", "SA"):
        params = prepare_linked_params(weight, bias, method=method)  # one-time prep

        out = jax.block_until_ready(
            linked_forward_prepared(x_1d, params, sample_batch=sample_batch))
        ref = reference_forward(x_1d, weight, bias, method=method,
                                sample_batch=sample_batch)
        assert out.shape == (sample_batch, out_units)
        assert jnp.allclose(out, ref, atol=1e-5, rtol=1e-5), ("1d", method)

        out = jax.block_until_ready(linked_forward_prepared(x_2d, params))
        ref = reference_forward(x_2d, weight, bias, method=method)
        assert out.shape == (sample_batch, out_units)
        assert jnp.allclose(out, ref, atol=1e-5, rtol=1e-5), ("2d", method)

    # ---- Multi-tile grid path (accumulation over K, i/j tiling) -------------
    B2, K2, N2 = 16, 512, 384
    bound2 = 1.0 / (K2 ** 0.5)
    weight2 = jax.random.uniform(k_w2, (N2, K2), minval=-bound2, maxval=bound2,
                                 dtype=jnp.float32)
    bias2 = jax.random.uniform(k_b2, (N2,), minval=-bound2, maxval=bound2,
                               dtype=jnp.float32)
    x2 = jax.random.uniform(k_x2, (B2, K2), dtype=jnp.float32)
    small_caps = dict(tm=8, tk=128, tn=128)      # force grid (2, 3, 4) for coverage

    for method in ("determ", "SA"):
        out = jax.block_until_ready(
            linked_forward(x2, weight2, bias2, method=method, tile_caps=small_caps))
        ref = reference_forward(x2, weight2, bias2, method=method)
        assert out.shape == (B2, N2)
        assert jnp.allclose(out, ref, atol=1e-3, rtol=1e-4), ("tiled", method)

    print("KERNEL_OK")
</pallas_src>

<mosaic_0001>
module attributes {stable_mosaic.version = 11 : i64} {
  func.func @_single_tile_kernel(%arg0: memref<8x128xf32, #tpu.memory_space<vmem>>, %arg1: memref<128x128xf32, #tpu.memory_space<vmem>>, %arg2: memref<1x128xf32, #tpu.memory_space<vmem>>, %arg3: memref<8x128xf32, #tpu.memory_space<vmem>>) attributes {dimension_semantics = [], scalar_prefetch = 0 : i64, scratch_operands = 0 : i64, tpu.core_type = #tpu.core_type<tc>} {
    %c0 = arith.constant 0 : index
    %c0_0 = arith.constant 0 : index
    %0 = vector.load %arg0[%c0, %c0_0] : memref<8x128xf32, #tpu.memory_space<vmem>>, vector<8x128xf32>
    %c0_1 = arith.constant 0 : index
    %c0_2 = arith.constant 0 : index
    %1 = vector.load %arg1[%c0_1, %c0_2] : memref<128x128xf32, #tpu.memory_space<vmem>>, vector<128x128xf32>
    %cst = arith.constant dense<0.000000e+00> : vector<8x128xf32>
    %2 = tpu.matmul %0, %1, %cst {dimension_numbers = #tpu.dot_dimension_numbers<[1], [0], [0], [1], [0, 0, 1, 1], [], []>} : vector<8x128xf32>, vector<128x128xf32>, vector<8x128xf32> -> vector<8x128xf32>
    %c0_3 = arith.constant 0 : index
    %c0_4 = arith.constant 0 : index
    %3 = vector.load %arg2[%c0_3, %c0_4] : memref<1x128xf32, #tpu.memory_space<vmem>>, vector<1x128xf32>
    %4 = vector.broadcast %3 : vector<1x128xf32> to vector<8x128xf32>
    %5 = arith.addf %2, %4 : vector<8x128xf32>
    %c0_5 = arith.constant 0 : index
    %c0_6 = arith.constant 0 : index
    %6 = vector.load %arg3[%c0_5, %c0_6] : memref<8x128xf32, #tpu.memory_space<vmem>>, vector<8x128xf32>
    tpu.vector_store %arg3[%c0_5, %c0_6], %5 {strides = array<i32>} : memref<8x128xf32, #tpu.memory_space<vmem>>, vector<8x128xf32>,
    return
  }
}

</mosaic_0001>

<bundles_post_ra>
// kernel: tpu_custom_call.1
= control target key start
LH: loop header
LB: loop body
LE: loop exit
PB: predicated region body
PF: predicated region fallthrough
CT: control target
= control target key end

     0   :  { %8 = vsyncpa [#allocation3], 0  ;;  %s226_s0 = inlined_call_operand.hbm [shape: f32[8,128], index: 0, kind: input, shape index: {}]   ;;  %s227_s1 = inlined_call_operand.hbm [shape: f32[128,128], index: 1, kind: input, shape index: {}]   ;;  %s228_s2 = inlined_call_operand.vmem [shape: f32[1,128], index: 2, kind: input, shape index: {}]   ;;  %s229_s3 = inlined_call_operand.hbm [shape: f32[8,128], index: 3, kind: output, shape index: {}]  }
   0x1   :  { %9 = vsyncpa [#allocation6], 0 }
   0x2   :  { %10 = vsyncpa [#allocation4], 0  ;;  %s16_s14 = sshll.u32 %s226_s0, 4  ;;  %s189_s15 = smov [#allocation2]   ;;  %s17_s14 = int_to_ptr.hbm [resolvable:$true] %s16_s14 }
   0x3   :  { %s18_s16 = sshll.u32 %s189_s15, 4  ;;  %s26_s19 = sshll.u32 %s227_s1, 4  ;;  %s19_s16 = int_to_ptr.vmem [resolvable:$true] %s18_s16  ;;  %s27_s19 = int_to_ptr.hbm [resolvable:$true] %s26_s19 }
   0x4   :  { %21 = dma.hbm_to_vmem [thread:$0]  %s17_s14, 128, %s19_s16, [#allocation3]  }
   0x5   :  { %s190_s20 = smov [#allocation5]   ;;  %s191_s22 = smov 128  }
   0x6   :  { %s28_s21 = sshll.u32 %s190_s20, 4  ;;  %s192_s23 = smov 8   ;;  %s29_s21 = int_to_ptr.vmem [resolvable:$true] %s28_s21 }
   0x7   :  { %34 = dma.hbm_to_vmem [thread:$0]  %s27_s19, 2048, %s29_s21, [#allocation6], %s191_s22, %s191_s22, %s192_s23  }
   0x8   :  { %183 = dma.done.wait [#allocation3], 128  }
   0x9   :  { %184 = vsyncadd [#allocation3], 4294967168 }
   0xa   :  { %185 = dma.done.wait [#allocation6], 2048  }
   0xb   :  { %186 = vsyncadd [#allocation6], 4294965248  ;;  %v61_v0 = vld [vmem:[#allocation5 + $0x78] sm:$0xff]  ;;  %v60_v1 = vld [vmem:[#allocation5 + $0x70] sm:$0xff]  ;;  %s193_s24 = smov [#allocation7]   ;;  %s94_s28 = sshll.u32 %s229_s3, 4  ;;  %s95_s28 = int_to_ptr.hbm [resolvable:$true] %s94_s28 }
   0xc   :  { %66 = vmatpush.msra.mxu0 %v61_v0  ;;  %v59_v2 = vld [vmem:[#allocation5 + $0x68] sm:$0xff]  ;;  %v58_v3 = vld [vmem:[#allocation5 + $0x60] sm:$0xff]  ;;  %v57_v4 = vld [vmem:[#allocation5 + $0x58] sm:$0xff]  ;;  %s92_s25 = sshll.u32 %s193_s24, 4  ;;  %s93_s25 = int_to_ptr.vmem [resolvable:$true] %s92_s25 }
   0xd   :  { %v56_v5 = vld [vmem:[#allocation5 + $0x50] sm:$0xff]  ;;  %v55_v6 = vld [vmem:[#allocation5 + $0x48] sm:$0xff]  ;;  %v54_v7 = vld [vmem:[#allocation5 + $0x40] sm:$0xff] }
   0xe   :  { %67 = vmatpush.msra.mxu0 %v60_v1  ;;  %v53_v8 = vld [vmem:[#allocation5 + $0x38] sm:$0xff]  ;;  %v52_v9 = vld [vmem:[#allocation5 + $0x30] sm:$0xff]  ;;  %v51_v10 = vld [vmem:[#allocation5 + $0x28] sm:$0xff] }
   0xf   :  { %v50_v11 = vld [vmem:[#allocation5 + $0x20] sm:$0xff]  ;;  %v49_v12 = vld [vmem:[#allocation5 + $0x18] sm:$0xff]  ;;  %v48_v13 = vld [vmem:[#allocation5 + $0x10] sm:$0xff] }
  0x10   :  { %68 = vmatpush.msra.mxu0 %v59_v2  ;;  %v47_v14 = vld [vmem:[#allocation5 + $0x8] sm:$0xff]  ;;  %v46_v15 = vld [vmem:[#allocation5] sm:$0xff]  ;;  %v45_v16 = vld [vmem:[#allocation2] sm:$0xff] }
  0x11   :  { %v110_v17 = vld [vmem:[%s228_s2] ss:$0 sm:$0xff] }
  0x12   :  { %69 = vmatpush.msra.mxu0 %v58_v3 }
  0x14   :  { %70 = vmatpush.msra.mxu0 %v57_v4 }
  0x16   :  { %71 = vmatpush.msra.mxu0 %v56_v5 }
  0x18   :  { %72 = vmatpush.msra.mxu0 %v55_v6 }
  0x1a   :  { %73 = vmatpush.msra.mxu0 %v54_v7 }
  0x1c   :  { %74 = vmatpush.msra.mxu0 %v53_v8 }
  0x1e   :  { %75 = vmatpush.msra.mxu0 %v52_v9 }
  0x20   :  { %76 = vmatpush.msra.mxu0 %v51_v10 }
  0x22   :  { %77 = vmatpush.msra.mxu0 %v50_v11 }
  0x24   :  { %78 = vmatpush.msra.mxu0 %v49_v12 }
  0x26   :  { %79 = vmatpush.msra.mxu0 %v48_v13 }
  0x28   :  { %80 = vmatpush.msra.mxu0 %v47_v14 }
  0x2a   :  { %81 = vmatpush.msra.mxu0 %v46_v15 }
  0x2b   :  { %82 = vmatmul.f32.vlgmr.msra.gmra.mxu0 %v45_v16 }
  0xa8   :  { %v83_v18 = vpop.f32.mrf.mxu0 }
  0xa9   :  { %v84_v19 = vadd.f32 %v110_v17, %v83_v18 }
  0xab   :  { %86 = vst [vmem:[#allocation7] sm:$0xff] %v84_v19 }
  0xac   :  { %97 = dma.vmem_to_hbm [thread:$0]  %s93_s25, 128, %s95_s28, [#allocation4]  }
  0xad   :  { %187 = dma.done.wait [#allocation4], 128  }
  0xae   :  { %188 = vsyncadd [#allocation4], 4294967168 }
  0xaf   :  { %102 = vsyncpa [#allocation3], 1 }
  0xb0   :  { %103 = vsyncpa [#allocation6], 1 }
  0xb1   :  { %104 = vsyncpa [#allocation4], 1 }

</bundles_post_ra>
